<compile_context>
chip_gen: v6e
topology: v6e:2x2x1
jax: 0.10.0
libtpu: 0.0.40
codegen_flags: <defaults>
</compile_context>

<pallas_src>
import functools

import jax
import jax.numpy as jnp
from jax.experimental import pallas as pl
from jax.experimental.pallas import tpu as pltpu

SUBLANE = 8  # second-to-last dim granularity for f32 tiles


def _round_up(x, m):
    return (x + m - 1) // m * m


def _mlp_kernel(x_ref, w1_ref, b1_ref, w2_ref, b2_ref, o_ref):
    # fc1 + ReLU (MXU matmul, f32 accumulation).
    h = jnp.dot(x_ref[...], w1_ref[...], preferred_element_type=jnp.float32)
    h = jnp.maximum(h + b1_ref[...], 0.0)          # b1 is (1, Hp) -> broadcasts over batch
    # fc2 — keep the f32 accumulator into the second dot (no downcast of h).
    q = jnp.dot(h, w2_ref[...], preferred_element_type=jnp.float32)
    o_ref[...] = (q + b2_ref[...]).astype(o_ref.dtype)


def _pick_batch_tile(B, block_b):
    """Batch tile: full-dim block for tiny batches, otherwise a multiple of 8
    sized so the grid has >= 2 steps (v7x megacore) but stays <= block_b."""
    if B <= SUBLANE:
        return B                                     # block == full array dim (legal)
    tb = min(block_b, _round_up(pl.cdiv(B, 2), SUBLANE))
    return max(tb, SUBLANE)


@functools.partial(jax.jit, static_argnames=("block_b",))
def network_forward(state, w1, b1, w2, b2, *, block_b=4096):
    """state: (B, input_size); w1: (input_size, 30); b1: (1, 30) or (30,);
    w2: (30, nb_action); b2: (1, nb_action) or (nb_action,)  ->  (B, nb_action)."""
    B, in_features = state.shape
    hidden = w1.shape[1]
    nb_action = w2.shape[1]
    dtype = state.dtype

    # --- pad only the hidden dim, to a multiple of 8 (not 128): math unchanged
    #     since padded W1 columns feed relu(0)=0 and padded W2 rows contribute 0.
    hid_p = _round_up(hidden, SUBLANE)
    w1p = jnp.zeros((in_features, hid_p), dtype).at[:, :hidden].set(w1)
    b1p = jnp.zeros((1, hid_p), dtype).at[:, :hidden].set(b1.reshape(1, -1))
    w2p = jnp.zeros((hid_p, nb_action), dtype).at[:hidden, :].set(w2)
    b2p = b2.reshape(1, nb_action).astype(dtype)

    # --- batch tile / grid: no wrapper-side pad; Pallas masks the partial tail block.
    tb = _pick_batch_tile(B, block_b)
    grid = (pl.cdiv(B, tb),)

    flops = 2 * B * (in_features * hid_p + hid_p * nb_action)
    bytes_accessed = 4 * (B * in_features + in_features * hid_p + hid_p
                          + hid_p * nb_action + nb_action + B * nb_action)

    out = pl.pallas_call(
        _mlp_kernel,
        out_shape=jax.ShapeDtypeStruct((B, nb_action), dtype),
        grid=grid,
        in_specs=[
            pl.BlockSpec((tb, in_features), lambda i: (i, 0)),      # pipelined state tile
            pl.BlockSpec((in_features, hid_p), lambda i: (0, 0)),   # resident weights/biases
            pl.BlockSpec((1, hid_p), lambda i: (0, 0)),
            pl.BlockSpec((hid_p, nb_action), lambda i: (0, 0)),
            pl.BlockSpec((1, nb_action), lambda i: (0, 0)),
        ],
        out_specs=pl.BlockSpec((tb, nb_action), lambda i: (i, 0)),  # unpadded output (masked vst)
        compiler_params=pltpu.CompilerParams(
            dimension_semantics=("parallel",)),                     # megacore sharding on v7x
        cost_estimate=pl.CostEstimate(
            flops=flops, transcendentals=0, bytes_accessed=bytes_accessed),
    )(state, w1p, b1p, w2p, b2p)

    return out


def init_params(key, input_size, nb_action, hidden=30, dtype=jnp.float32):
    """Deterministic init matching nn.Linear's U(-1/sqrt(fan_in), 1/sqrt(fan_in))."""
    k1, k2, k3, k4 = jax.random.split(key, 4)
    bound1 = 1.0 / jnp.sqrt(jnp.float32(input_size))
    bound2 = 1.0 / jnp.sqrt(jnp.float32(hidden))
    w1 = jax.random.uniform(k1, (input_size, hidden), dtype, -bound1, bound1)
    b1 = jax.random.uniform(k2, (1, hidden), dtype, -bound1, bound1)
    w2 = jax.random.uniform(k3, (hidden, nb_action), dtype, -bound2, bound2)
    b2 = jax.random.uniform(k4, (1, nb_action), dtype, -bound2, bound2)
    return w1, b1, w2, b2


def _ref(state, w1, b1, w2, b2):
    return jnp.maximum(state @ w1 + b1, 0.0) @ w2 + b2


if __name__ == "__main__":
    key = jax.random.PRNGKey(0)
    # Self-driving car module uses input_size=5 (3 sensors + orientation +/-), nb_action=3.
    input_size, nb_action = 5, 3
    k_params, k_s1, k_s2 = jax.random.split(key, 3)
    w1, b1, w2, b2 = init_params(k_params, input_size, nb_action)

    # Case 1: tiny inference batch (single grid step, block == full batch dim).
    state_small = jax.random.normal(k_s1, (2, input_size), jnp.float32)
    q_small = network_forward(state_small, w1, b1, w2, b2)
    jax.block_until_ready(q_small)
    assert q_small.shape == (2, nb_action)
    assert jnp.allclose(q_small, _ref(state_small, w1, b1, w2, b2), atol=1e-5, rtol=1e-5)

    # Case 2: replay-style batch exercising multiple pipelined grid steps (tb=16 -> 4 steps).
    state_big = jax.random.normal(k_s2, (64, input_size), jnp.float32)
    q_big = network_forward(state_big, w1, b1, w2, b2, block_b=16)
    jax.block_until_ready(q_big)
    assert q_big.shape == (64, nb_action)
    assert jnp.allclose(q_big, _ref(state_big, w1, b1, w2, b2), atol=1e-5, rtol=1e-5)

    # Case 3: batch not a multiple of the tile -> partial tail block masked by Pallas.
    state_odd = jax.random.normal(k_s2, (37, input_size), jnp.float32)
    q_odd = network_forward(state_odd, w1, b1, w2, b2, block_b=16)
    jax.block_until_ready(q_odd)
    assert q_odd.shape == (37, nb_action)
    assert jnp.allclose(q_odd, _ref(state_odd, w1, b1, w2, b2), atol=1e-5, rtol=1e-5)

    print("KERNEL_OK")
</pallas_src>

<mosaic_0001>
module attributes {stable_mosaic.version = 11 : i64} {
  func.func @_mlp_kernel(%arg0: i32, %arg1: memref<2x5xf32, #tpu.memory_space<vmem>>, %arg2: memref<5x32xf32, #tpu.memory_space<vmem>>, %arg3: memref<1x32xf32, #tpu.memory_space<vmem>>, %arg4: memref<32x3xf32, #tpu.memory_space<vmem>>, %arg5: memref<1x3xf32, #tpu.memory_space<vmem>>, %arg6: memref<2x3xf32, #tpu.memory_space<vmem>>) attributes {dimension_semantics = [#tpu.dimension_semantics<parallel>], iteration_bounds = array<i64: 1>, scalar_prefetch = 0 : i64, scratch_operands = 0 : i64, tpu.core_type = #tpu.core_type<tc>, window_params = [{transform_indices = @transform_0, window_bounds = array<i64: 2, 5>}, {pipeline_mode = #tpu.pipeline_mode<synchronous>, transform_indices = @transform_1, window_bounds = array<i64: 5, 32>}, {pipeline_mode = #tpu.pipeline_mode<synchronous>, transform_indices = @transform_2, window_bounds = array<i64: 1, 32>}, {pipeline_mode = #tpu.pipeline_mode<synchronous>, transform_indices = @transform_3, window_bounds = array<i64: 32, 3>}, {pipeline_mode = #tpu.pipeline_mode<synchronous>, transform_indices = @transform_4, window_bounds = array<i64: 1, 3>}, {transform_indices = @transform_5, window_bounds = array<i64: 2, 3>}]} {
    %c0 = arith.constant 0 : index
    %c0_0 = arith.constant 0 : index
    %0 = vector.load %arg1[%c0, %c0_0] : memref<2x5xf32, #tpu.memory_space<vmem>>, vector<2x5xf32>
    %c0_1 = arith.constant 0 : index
    %c0_2 = arith.constant 0 : index
    %1 = vector.load %arg2[%c0_1, %c0_2] : memref<5x32xf32, #tpu.memory_space<vmem>>, vector<5x32xf32>
    %cst = arith.constant dense<0.000000e+00> : vector<2x32xf32>
    %2 = tpu.matmul %0, %1, %cst {dimension_numbers = #tpu.dot_dimension_numbers<[1], [0], [0], [1], [0, 0, 1, 1], [], []>} : vector<2x5xf32>, vector<5x32xf32>, vector<2x32xf32> -> vector<2x32xf32>
    %c0_3 = arith.constant 0 : index
    %c0_4 = arith.constant 0 : index
    %3 = vector.load %arg3[%c0_3, %c0_4] : memref<1x32xf32, #tpu.memory_space<vmem>>, vector<1x32xf32>
    %4 = vector.broadcast %3 : vector<1x32xf32> to vector<2x32xf32>
    %5 = arith.addf %2, %4 : vector<2x32xf32>
    %cst_5 = arith.constant 0.000000e+00 : f32
    %6 = vector.broadcast %cst_5 : f32 to vector<2x32xf32>
    %7 = arith.maximumf %5, %6 : vector<2x32xf32>
    %c0_6 = arith.constant 0 : index
    %c0_7 = arith.constant 0 : index
    %8 = vector.load %arg4[%c0_6, %c0_7] : memref<32x3xf32, #tpu.memory_space<vmem>>, vector<32x3xf32>
    %cst_8 = arith.constant dense<0.000000e+00> : vector<2x3xf32>
    %9 = tpu.matmul %7, %8, %cst_8 {dimension_numbers = #tpu.dot_dimension_numbers<[1], [0], [0], [1], [0, 0, 1, 1], [], []>} : vector<2x32xf32>, vector<32x3xf32>, vector<2x3xf32> -> vector<2x3xf32>
    %c0_9 = arith.constant 0 : index
    %c0_10 = arith.constant 0 : index
    %10 = vector.load %arg5[%c0_9, %c0_10] : memref<1x3xf32, #tpu.memory_space<vmem>>, vector<1x3xf32>
    %11 = vector.broadcast %10 : vector<1x3xf32> to vector<2x3xf32>
    %12 = arith.addf %9, %11 : vector<2x3xf32>
    %c0_11 = arith.constant 0 : index
    %c0_12 = arith.constant 0 : index
    %13 = vector.load %arg6[%c0_11, %c0_12] : memref<2x3xf32, #tpu.memory_space<vmem>>, vector<2x3xf32>
    tpu.vector_store %arg6[%c0_11, %c0_12], %12 {strides = array<i32>} : memref<2x3xf32, #tpu.memory_space<vmem>>, vector<2x3xf32>,
    return
  }
  func.func @transform_0(%arg0: i32) -> (i32, i32) {
    %c0_i32 = arith.constant 0 : i32
    %c0_i32_0 = arith.constant 0 : i32
    return %arg0, %c0_i32 : i32, i32
  }
  func.func @transform_1(%arg0: i32) -> (i32, i32) {
    %c0_i32 = arith.constant 0 : i32
    %c0_i32_0 = arith.constant 0 : i32
    %c0_i32_1 = arith.constant 0 : i32
    return %c0_i32, %c0_i32_0 : i32, i32
  }
  func.func @transform_2(%arg0: i32) -> (i32, i32) {
    %c0_i32 = arith.constant 0 : i32
    %c0_i32_0 = arith.constant 0 : i32
    %c0_i32_1 = arith.constant 0 : i32
    return %c0_i32, %c0_i32_0 : i32, i32
  }
  func.func @transform_3(%arg0: i32) -> (i32, i32) {
    %c0_i32 = arith.constant 0 : i32
    %c0_i32_0 = arith.constant 0 : i32
    %c0_i32_1 = arith.constant 0 : i32
    return %c0_i32, %c0_i32_0 : i32, i32
  }
  func.func @transform_4(%arg0: i32) -> (i32, i32) {
    %c0_i32 = arith.constant 0 : i32
    %c0_i32_0 = arith.constant 0 : i32
    %c0_i32_1 = arith.constant 0 : i32
    return %c0_i32, %c0_i32_0 : i32, i32
  }
  func.func @transform_5(%arg0: i32) -> (i32, i32) {
    %c0_i32 = arith.constant 0 : i32
    %c0_i32_0 = arith.constant 0 : i32
    return %arg0, %c0_i32 : i32, i32
  }
}

</mosaic_0001>

<bundles_post_ra>
// kernel: network_forward.1
= control target key start
LH: loop header
LB: loop body
LE: loop exit
PB: predicated region body
PF: predicated region fallthrough
CT: control target
= control target key end

     0   :  { %vm34_vm0 = vcmask 1044480   ;;  %vm30_vm1 = vcmask 39936   ;;  %v263_v1 = vmov 0.0   ;;  %vm264_vm2 = vmmov 0   ;;  %s323_s0 = inlined_call_operand.vmem [shape: f32[2,5], index: 0, kind: input, shape index: {}]   ;;  %s324_s1 = inlined_call_operand.vmem [shape: f32[5,32], index: 1, kind: input, shape index: {}]   ;;  %s325_s2 = inlined_call_operand.vmem [shape: f32[1,32], index: 2, kind: input, shape index: {}]   ;;  %s326_s3 = inlined_call_operand.vmem [shape: f32[32,3], index: 3, kind: input, shape index: {}]   ;;  %s327_s4 = inlined_call_operand.vmem [shape: f32[1,3], index: 4, kind: input, shape index: {}]   ;;  %s328_s5 = inlined_call_operand.hbm [shape: f32[2,3], index: 5, kind: output, shape index: {}]  }
   0x1   :  { %v22_v0 = vld [vmem:[%s324_s1] sm:$0x1f]  ;;  %222 = vmatprep.subr.mxu0 %v263_v1  ;;  %224 = vmatprep.mubr.msk.f32.mxu0 %vm264_vm2, %v263_v1  ;;  %v112_v3 = vld [vmem:[%s326_s3 + $0x18] sm:$0xff] }
   0x2   :  { %v21_v2 = vld [vmem:[%s323_s0] sm:$0x3]  ;;  %223 = vmatpush3.msk.msra.mxu0 %vm34_vm0, %v22_v0  ;;  %227 = vmatprep.subr.mxu1 %v263_v1 }
   0x3   :  { %10 = vsyncpa [#allocation3], 0  ;;  %225 = vmatmul.mubr.msk.f32.vlgmr.msra.gmra.mxu0 %vm30_vm1, %v21_v2  ;;  %228 = vmatpush3.msra.mxu1 %v112_v3  ;;  %v111_v4 = vld [vmem:[%s326_s3 + $0x10] sm:$0xff]  ;;  %v110_v5 = vld [vmem:[%s326_s3 + $0x8] sm:$0xff]  ;;  %vm120_vm3 = vcmask 261120   ;;  %s265_s7 = smov [#allocation2]  }
   0x4   :  { %229 = vmatprep.subr.mxu1 %v263_v1  ;;  %235 = vmatprep.mubr.msk.f32.mxu1 %vm264_vm2, %v263_v1  ;;  %v109_v6 = vld [vmem:[%s326_s3] sm:$0xff]  ;;  %s202_s8 = sshll.u32 %s265_s7, 4  ;;  %vm194_vm4 = vcmask 17408   ;;  %s203_s8 = int_to_ptr.vmem [resolvable:$true] %s202_s8 }
   0x5   :  { %230 = vmatpush3.msra.mxu1 %v111_v4  ;;  %v210_v7 = vld [vmem:[%s325_s2] ss:$0 sm:$0xff]  ;;  %s241_s3 = scalar_lea.vmem %s203_s8, 32  ;;  %p246_p1 = scmp.lt.s32.totalorder %s203_s8, %s203_s8 }
   0x6   :  { %231 = vmatprep.subr.mxu1 %v263_v1  ;;  %v213_v12 = vld [vmem:[%s327_s4] ss:$0 sm:$0xff]  ;;  %p242_p0 = scmp.ne.s32.totalorder %s203_s8, %s241_s3  ;;  %p247_p2 = scmp.lt.s32.totalorder %s241_s3, %s241_s3 }
   0x7   :  { %232 = vmatpush3.msra.mxu1 %v110_v5 }
   0x8   :  { %233 = vmatprep.subr.mxu1 %v263_v1  ;;  %p248_p3 = por %p247_p2, %p246_p1 }
   0x9   :  { %234 = vmatpush3.msra.mxu1 %v109_v6 }
   0xa   :  { %p249_p4 = pnand %p248_p3, %p242_p0 }
  0xc3   :  { %v104_v8 = vpop.f32.mrf.mxu0 }
  0xc4   :  { %v105_v9 = vadd.f32 %v210_v7, %v104_v8 }
  0xc5   :  { %v226_v10 = vpop.f32.mrf.mxu0 }
  0xc6   :  { %v108_v11 = vmax.f32 %v105_v9, 0.0 }
  0xc8   :  { %236 = vmatmul.mubr.msk.f32.vlgmr.msra.gmra.mxu1 %vm120_vm3, %v108_v11 }
 0x188   :  { %v190_v13 = vpop.f32.mrf.mxu1 }
 0x189   :  { %v191_v14 = vadd.f32 %v213_v12, %v190_v13 }
 0x18a   :  { %v237_v15 = vpop.f32.mrf.mxu1 }
 0x18b   :  { %195 = vst.msk [vmem:[#allocation2] sm:$0x3] %vm194_vm4, %v191_v14 }
 0x18c   :  { %252 = shalt.err (!%p249_p4)
}
 0x18d   :  { %205 = dma.vmem_to_hbm [thread:$0]  %s203_s8, 32, %s328_s5, [#allocation3]  }
 0x18e   :  { %261 = dma.done.wait [#allocation3], 32  }
 0x18f   :  { %262 = vsyncadd [#allocation3], 4294967264 }
 0x190   :  { %209 = vsyncpa [#allocation3], 1 }

</bundles_post_ra>
